<compile_context>
chip_gen: v6e
topology: v6e:2x2x1
jax: 0.10.0
libtpu: 0.0.40
codegen_flags: <defaults>
</compile_context>

<pallas_src>
import functools

import jax
import jax.numpy as jnp
from jax.experimental import pallas as pl
from jax.experimental.pallas import tpu as pltpu

EPS = 1e-5
_BASE_VMEM_LIMIT = 32 * 1024 * 1024      # scoped-VMEM floor (safe on all gens)
_MAX_VMEM_LIMIT = 64 * 1024 * 1024       # never exceed v7x physical VMEM
_TILE_BUDGET = 4 * 1024 * 1024           # target bytes for one (TN, C, TM) block


def _pick_tiles(n, c, m, itemsize, budget=_TILE_BUDGET):
    """Pick (TN, TM) with TN | N, TM | M, lane-dense TM (multiple of 128)."""
    if m % 128 == 0:
        tm = 128
        for cand in (4096, 2048, 1024, 512, 256, 128):
            if m % cand == 0 and c * cand * itemsize <= budget:
                tm = cand
                break
    else:
        # Ragged spatial extent: use the whole (lane) dimension as one block.
        tm = m
    tn = 1
    for cand in range(n, 0, -1):
        if n % cand == 0 and cand * c * tm * itemsize <= budget:
            tn = cand
            break
    return tn, tm


def _stats_kernel(ab_ref, x_ref, gamma_ref, beta_ref,
                  scale_ref, shift_ref,
                  sum_acc, sq_acc, *, inv_count, eps):
    ni = pl.program_id(0)
    mi = pl.program_id(1)

    @pl.when((ni == 0) & (mi == 0))
    def _init():
        sum_acc[...] = jnp.zeros_like(sum_acc)
        sq_acc[...] = jnp.zeros_like(sq_acc)

    # Single sweep per tile: running per-channel sum and sum-of-squares (f32).
    x = x_ref[...].astype(jnp.float32)                      # (TN, C, TM)
    s_nc = jnp.sum(x, axis=0)                               # (C, TM)  VALU
    q_nc = jnp.sum(x * x, axis=0)                           # (C, TM)  VALU
    sum_acc[...] += jnp.sum(s_nc, axis=1, keepdims=True)    # (C, 1)   XLU
    sq_acc[...] += jnp.sum(q_nc, axis=1, keepdims=True)     # (C, 1)   XLU

    @pl.when((ni == pl.num_programs(0) - 1) & (mi == pl.num_programs(1) - 1))
    def _finalize():
        a = ab_ref[0]                                       # SMEM scalars
        b = ab_ref[1]
        mean = sum_acc[...] * inv_count                     # (C, 1)
        var = jnp.maximum(sq_acc[...] * inv_count - mean * mean, 0.0)
        inv_std = jax.lax.rsqrt(var + eps)                  # EUP
        g = gamma_ref[...]                                  # (C, 1)
        be = beta_ref[...]
        scale_ref[...] = a + b * g * inv_std
        shift_ref[...] = b * (be - g * mean * inv_std)


def _apply_kernel(x_ref, scale_ref, shift_ref, o_ref):
    x = x_ref[...].astype(jnp.float32)                      # (TN, C, TM)
    scale = scale_ref[...][None, :, :]                      # (1, C, 1)
    shift = shift_ref[...][None, :, :]
    o_ref[...] = (x * scale + shift).astype(o_ref.dtype)    # lane-dense store


def adaptive_batch_norm_2d(x_nchw, gamma, beta, a, b):
    """out = a * x + b * BatchNorm2d(x).  x_nchw: (N, C, H, W); gamma/beta: (C,)."""
    n, c, h, w = x_nchw.shape
    m = h * w
    x3 = x_nchw.reshape(n, c, m)                 # free view, NO transpose

    gamma2 = jnp.asarray(gamma, jnp.float32).reshape(c, 1)
    beta2 = jnp.asarray(beta, jnp.float32).reshape(c, 1)
    ab = jnp.stack([jnp.asarray(a, jnp.float32).reshape(()),
                    jnp.asarray(b, jnp.float32).reshape(())])   # (2,) -> SMEM

    tn, tm = _pick_tiles(n, c, m, x_nchw.dtype.itemsize)
    grid = (n // tn, m // tm)

    # Scoped-VMEM budget: pass 2 double-buffers input + output blocks.
    blk_bytes = tn * c * tm * x_nchw.dtype.itemsize
    vmem_limit = int(min(_MAX_VMEM_LIMIT,
                         max(_BASE_VMEM_LIMIT, 4 * blk_bytes + (2 << 20))))

    # ---- Pass 1: per-channel stats -> fused (scale, shift). Reduction grid,
    # resident (constant-index) accumulator outputs => both axes "arbitrary".
    scale, shift = pl.pallas_call(
        functools.partial(_stats_kernel, inv_count=1.0 / float(n * m), eps=EPS),
        out_shape=(jax.ShapeDtypeStruct((c, 1), jnp.float32),
                   jax.ShapeDtypeStruct((c, 1), jnp.float32)),
        grid=grid,
        in_specs=[
            pl.BlockSpec(memory_space=pltpu.MemorySpace.SMEM),        # a, b
            pl.BlockSpec((tn, c, tm), lambda ni, mi: (ni, 0, mi)),    # x
            pl.BlockSpec((c, 1), lambda ni, mi: (0, 0)),              # gamma
            pl.BlockSpec((c, 1), lambda ni, mi: (0, 0)),              # beta
        ],
        out_specs=(pl.BlockSpec((c, 1), lambda ni, mi: (0, 0)),
                   pl.BlockSpec((c, 1), lambda ni, mi: (0, 0))),
        scratch_shapes=[pltpu.VMEM((c, 1), jnp.float32),
                        pltpu.VMEM((c, 1), jnp.float32)],
        compiler_params=pltpu.CompilerParams(
            dimension_semantics=("arbitrary", "arbitrary"),
            vmem_limit_bytes=vmem_limit),
    )(ab, x3, gamma2, beta2)

    # ---- Pass 2: streaming apply, fully parallel (v7x megacore shards it).
    out3 = pl.pallas_call(
        _apply_kernel,
        out_shape=jax.ShapeDtypeStruct((n, c, m), x_nchw.dtype),
        grid=grid,
        in_specs=[
            pl.BlockSpec((tn, c, tm), lambda ni, mi: (ni, 0, mi)),
            pl.BlockSpec((c, 1), lambda ni, mi: (0, 0)),
            pl.BlockSpec((c, 1), lambda ni, mi: (0, 0)),
        ],
        out_specs=pl.BlockSpec((tn, c, tm), lambda ni, mi: (ni, 0, mi)),
        compiler_params=pltpu.CompilerParams(
            dimension_semantics=("parallel", "parallel"),
            vmem_limit_bytes=vmem_limit),
    )(x3, scale, shift)

    return out3.reshape(n, c, h, w)


def _reference(x_nchw, gamma, beta, a, b):
    x = x_nchw.astype(jnp.float32)
    mean = jnp.mean(x, axis=(0, 2, 3), keepdims=True)
    var = jnp.mean((x - mean) ** 2, axis=(0, 2, 3), keepdims=True)
    xhat = (x - mean) * jax.lax.rsqrt(var + EPS)
    bn = gamma.reshape(1, -1, 1, 1) * xhat + beta.reshape(1, -1, 1, 1)
    return a * x + b * bn


if __name__ == "__main__":
    key = jax.random.PRNGKey(0)
    N, C, H, W = 2, 4, 16, 16
    x = jax.random.normal(key, (N, C, H, W), dtype=jnp.float32)

    # Deterministic "parameters" (PyTorch module leaves a/b uninitialized;
    # BatchNorm2d affine defaults are gamma=1, beta=0).
    gamma = jnp.ones((C,), jnp.float32)
    beta = jnp.zeros((C,), jnp.float32)
    a = jnp.float32(0.7)
    b = jnp.float32(0.3)

    out = adaptive_batch_norm_2d(x, gamma, beta, a, b)
    out = jax.block_until_ready(out)

    ref = _reference(x, gamma, beta, a, b)
    assert out.shape == (N, C, H, W)
    assert jnp.allclose(out, ref, atol=1e-4, rtol=1e-4), "mismatch vs reference"

    print("KERNEL_OK")
</pallas_src>

<mosaic_0001>
module attributes {stable_mosaic.version = 11 : i64} {
  func.func @_stats_kernel(%arg0: i32, %arg1: i32, %arg2: memref<2xf32, #tpu.memory_space<smem>>, %arg3: memref<2x4x256xf32, #tpu.memory_space<vmem>>, %arg4: memref<4x1xf32, #tpu.memory_space<vmem>>, %arg5: memref<4x1xf32, #tpu.memory_space<vmem>>, %arg6: memref<4x1xf32, #tpu.memory_space<vmem>>, %arg7: memref<4x1xf32, #tpu.memory_space<vmem>>, %arg8: memref<4x1xf32, #tpu.memory_space<vmem>>, %arg9: memref<4x1xf32, #tpu.memory_space<vmem>>) attributes {dimension_semantics = [#tpu.dimension_semantics<arbitrary>, #tpu.dimension_semantics<arbitrary>], iteration_bounds = array<i64: 1, 1>, scalar_prefetch = 0 : i64, scratch_operands = 2 : i64, tpu.core_type = #tpu.core_type<tc>, window_params = [{transform_indices = @transform_0, window_bounds = array<i64: 2>}, {transform_indices = @transform_1, window_bounds = array<i64: 2, 4, 256>}, {pipeline_mode = #tpu.pipeline_mode<synchronous>, transform_indices = @transform_2, window_bounds = array<i64: 4, 1>}, {pipeline_mode = #tpu.pipeline_mode<synchronous>, transform_indices = @transform_3, window_bounds = array<i64: 4, 1>}, {pipeline_mode = #tpu.pipeline_mode<synchronous>, transform_indices = @transform_4, window_bounds = array<i64: 4, 1>}, {pipeline_mode = #tpu.pipeline_mode<synchronous>, transform_indices = @transform_5, window_bounds = array<i64: 4, 1>}]} {
    %c0_i32 = arith.constant 0 : i32
    %0 = arith.cmpi eq, %arg0, %c0_i32 : i32
    %c0_i32_0 = arith.constant 0 : i32
    %1 = arith.cmpi eq, %arg1, %c0_i32_0 : i32
    %2 = arith.andi %0, %1 : i1
    %3 = arith.extui %2 : i1 to i32
    %c0_i32_1 = arith.constant 0 : i32
    %4 = arith.cmpi ne, %3, %c0_i32_1 : i32
    scf.if %4 {
      %cst_18 = arith.constant 0.000000e+00 : f32
      %24 = vector.broadcast %cst_18 : f32 to vector<4x1xf32>
      %c0_19 = arith.constant 0 : index
      %c0_20 = arith.constant 0 : index
      %25 = vector.load %arg8[%c0_19, %c0_20] : memref<4x1xf32, #tpu.memory_space<vmem>>, vector<4x1xf32>
      tpu.vector_store %arg8[%c0_19, %c0_20], %24 {strides = array<i32>} : memref<4x1xf32, #tpu.memory_space<vmem>>, vector<4x1xf32>,
      %cst_21 = arith.constant 0.000000e+00 : f32
      %26 = vector.broadcast %cst_21 : f32 to vector<4x1xf32>
      %c0_22 = arith.constant 0 : index
      %c0_23 = arith.constant 0 : index
      %27 = vector.load %arg9[%c0_22, %c0_23] : memref<4x1xf32, #tpu.memory_space<vmem>>, vector<4x1xf32>
      tpu.vector_store %arg9[%c0_22, %c0_23], %26 {strides = array<i32>} : memref<4x1xf32, #tpu.memory_space<vmem>>, vector<4x1xf32>,
    } else {
    }
    %c0 = arith.constant 0 : index
    %c0_2 = arith.constant 0 : index
    %c0_3 = arith.constant 0 : index
    %5 = vector.load %arg3[%c0, %c0_2, %c0_3] : memref<2x4x256xf32, #tpu.memory_space<vmem>>, vector<2x4x256xf32>
    %cst = arith.constant dense<0.000000e+00> : vector<4x256xf32>
    %6 = vector.multi_reduction <add>, %5, %cst [0] : vector<2x4x256xf32> to vector<4x256xf32>
    %7 = arith.mulf %5, %5 : vector<2x4x256xf32>
    %cst_4 = arith.constant dense<0.000000e+00> : vector<4x256xf32>
    %8 = vector.multi_reduction <add>, %7, %cst_4 [0] : vector<2x4x256xf32> to vector<4x256xf32>
    %c0_5 = arith.constant 0 : index
    %c0_6 = arith.constant 0 : index
    %9 = vector.load %arg8[%c0_5, %c0_6] : memref<4x1xf32, #tpu.memory_space<vmem>>, vector<4x1xf32>
    %cst_7 = arith.constant dense<0.000000e+00> : vector<4xf32>
    %10 = vector.multi_reduction <add>, %6, %cst_7 [1] : vector<4x256xf32> to vector<4xf32>
    %11 = vector.shape_cast %10 : vector<4xf32> to vector<4x1xf32>
    %12 = arith.addf %9, %11 : vector<4x1xf32>
    %c0_8 = arith.constant 0 : index
    %c0_9 = arith.constant 0 : index
    %13 = vector.load %arg8[%c0_8, %c0_9] : memref<4x1xf32, #tpu.memory_space<vmem>>, vector<4x1xf32>
    tpu.vector_store %arg8[%c0_8, %c0_9], %12 {strides = array<i32>} : memref<4x1xf32, #tpu.memory_space<vmem>>, vector<4x1xf32>,
    %c0_10 = arith.constant 0 : index
    %c0_11 = arith.constant 0 : index
    %14 = vector.load %arg9[%c0_10, %c0_11] : memref<4x1xf32, #tpu.memory_space<vmem>>, vector<4x1xf32>
    %cst_12 = arith.constant dense<0.000000e+00> : vector<4xf32>
    %15 = vector.multi_reduction <add>, %8, %cst_12 [1] : vector<4x256xf32> to vector<4xf32>
    %16 = vector.shape_cast %15 : vector<4xf32> to vector<4x1xf32>
    %17 = arith.addf %14, %16 : vector<4x1xf32>
    %c0_13 = arith.constant 0 : index
    %c0_14 = arith.constant 0 : index
    %18 = vector.load %arg9[%c0_13, %c0_14] : memref<4x1xf32, #tpu.memory_space<vmem>>, vector<4x1xf32>
    tpu.vector_store %arg9[%c0_13, %c0_14], %17 {strides = array<i32>} : memref<4x1xf32, #tpu.memory_space<vmem>>, vector<4x1xf32>,
    %c0_i32_15 = arith.constant 0 : i32
    %19 = arith.cmpi eq, %arg0, %c0_i32_15 : i32
    %c0_i32_16 = arith.constant 0 : i32
    %20 = arith.cmpi eq, %arg1, %c0_i32_16 : i32
    %21 = arith.andi %19, %20 : i1
    %22 = arith.extui %21 : i1 to i32
    %c0_i32_17 = arith.constant 0 : i32
    %23 = arith.cmpi ne, %22, %c0_i32_17 : i32
    scf.if %23 {
      %c0_18 = arith.constant 0 : index
      %24 = memref.load %arg2[%c0_18] : memref<2xf32, #tpu.memory_space<smem>>
      %c1 = arith.constant 1 : index
      %25 = memref.load %arg2[%c1] : memref<2xf32, #tpu.memory_space<smem>>
      %c0_19 = arith.constant 0 : index
      %c0_20 = arith.constant 0 : index
      %26 = vector.load %arg8[%c0_19, %c0_20] : memref<4x1xf32, #tpu.memory_space<vmem>>, vector<4x1xf32>
      %cst_21 = arith.constant 0.001953125 : f32
      %27 = vector.broadcast %cst_21 : f32 to vector<4x1xf32>
      %28 = arith.mulf %26, %27 : vector<4x1xf32>
      %c0_22 = arith.constant 0 : index
      %c0_23 = arith.constant 0 : index
      %29 = vector.load %arg9[%c0_22, %c0_23] : memref<4x1xf32, #tpu.memory_space<vmem>>, vector<4x1xf32>
      %cst_24 = arith.constant 0.001953125 : f32
      %30 = vector.broadcast %cst_24 : f32 to vector<4x1xf32>
      %31 = arith.mulf %29, %30 : vector<4x1xf32>
      %32 = arith.mulf %28, %28 : vector<4x1xf32>
      %33 = arith.subf %31, %32 : vector<4x1xf32>
      %cst_25 = arith.constant 0.000000e+00 : f32
      %34 = vector.broadcast %cst_25 : f32 to vector<4x1xf32>
      %35 = arith.maximumf %33, %34 : vector<4x1xf32>
      %cst_26 = arith.constant 9.99999974E-6 : f32
      %36 = vector.broadcast %cst_26 : f32 to vector<4x1xf32>
      %37 = arith.addf %35, %36 : vector<4x1xf32>
      %38 = math.rsqrt %37 : vector<4x1xf32>
      %c0_27 = arith.constant 0 : index
      %c0_28 = arith.constant 0 : index
      %39 = vector.load %arg4[%c0_27, %c0_28] : memref<4x1xf32, #tpu.memory_space<vmem>>, vector<4x1xf32>
      %c0_29 = arith.constant 0 : index
      %c0_30 = arith.constant 0 : index
      %40 = vector.load %arg5[%c0_29, %c0_30] : memref<4x1xf32, #tpu.memory_space<vmem>>, vector<4x1xf32>
      %41 = vector.broadcast %25 : f32 to vector<4x1xf32>
      %42 = arith.mulf %41, %39 : vector<4x1xf32>
      %43 = arith.mulf %42, %38 : vector<4x1xf32>
      %44 = vector.broadcast %24 : f32 to vector<4x1xf32>
      %45 = arith.addf %44, %43 : vector<4x1xf32>
      %c0_31 = arith.constant 0 : index
      %c0_32 = arith.constant 0 : index
      %46 = vector.load %arg6[%c0_31, %c0_32] : memref<4x1xf32, #tpu.memory_space<vmem>>, vector<4x1xf32>
      tpu.vector_store %arg6[%c0_31, %c0_32], %45 {strides = array<i32>} : memref<4x1xf32, #tpu.memory_space<vmem>>, vector<4x1xf32>,
      %47 = arith.mulf %39, %28 : vector<4x1xf32>
      %48 = arith.mulf %47, %38 : vector<4x1xf32>
      %49 = arith.subf %40, %48 : vector<4x1xf32>
      %50 = vector.broadcast %25 : f32 to vector<4x1xf32>
      %51 = arith.mulf %50, %49 : vector<4x1xf32>
      %c0_33 = arith.constant 0 : index
      %c0_34 = arith.constant 0 : index
      %52 = vector.load %arg7[%c0_33, %c0_34] : memref<4x1xf32, #tpu.memory_space<vmem>>, vector<4x1xf32>
      tpu.vector_store %arg7[%c0_33, %c0_34], %51 {strides = array<i32>} : memref<4x1xf32, #tpu.memory_space<vmem>>, vector<4x1xf32>,
    } else {
    }
    return
  }
  func.func @transform_0(%arg0: i32, %arg1: i32) -> i32 {
    %c0_i32 = arith.constant 0 : i32
    %c0_i32_0 = arith.constant 0 : i32
    return %c0_i32 : i32
  }
  func.func @transform_1(%arg0: i32, %arg1: i32) -> (i32, i32, i32) {
    %c0_i32 = arith.constant 0 : i32
    %c0_i32_0 = arith.constant 0 : i32
    return %arg0, %c0_i32, %arg1 : i32, i32, i32
  }
  func.func @transform_2(%arg0: i32, %arg1: i32) -> (i32, i32) {
    %c0_i32 = arith.constant 0 : i32
    %c0_i32_0 = arith.constant 0 : i32
    %c0_i32_1 = arith.constant 0 : i32
    return %c0_i32, %c0_i32_0 : i32, i32
  }
  func.func @transform_3(%arg0: i32, %arg1: i32) -> (i32, i32) {
    %c0_i32 = arith.constant 0 : i32
    %c0_i32_0 = arith.constant 0 : i32
    %c0_i32_1 = arith.constant 0 : i32
    return %c0_i32, %c0_i32_0 : i32, i32
  }
  func.func @transform_4(%arg0: i32, %arg1: i32) -> (i32, i32) {
    %c0_i32 = arith.constant 0 : i32
    %c0_i32_0 = arith.constant 0 : i32
    %c0_i32_1 = arith.constant 0 : i32
    return %c0_i32, %c0_i32_0 : i32, i32
  }
  func.func @transform_5(%arg0: i32, %arg1: i32) -> (i32, i32) {
    %c0_i32 = arith.constant 0 : i32
    %c0_i32_0 = arith.constant 0 : i32
    %c0_i32_1 = arith.constant 0 : i32
    return %c0_i32, %c0_i32_0 : i32, i32
  }
}

</mosaic_0001>

<bundles_post_ra>
// kernel: tpu_custom_call.1
= control target key start
LH: loop header
LB: loop body
LE: loop exit
PB: predicated region body
PF: predicated region fallthrough
CT: control target
= control target key end

     0   :  { %11 = vsyncpa [#allocation6], 0  ;;  %s254_s0 = inlined_call_operand.vmem [shape: f32[2], index: 0, kind: input, shape index: {}]   ;;  %s255_s1 = inlined_call_operand.hbm [shape: f32[2,4,256], index: 1, kind: input, shape index: {}]   ;;  %s256_s2 = inlined_call_operand.vmem [shape: f32[4,1], index: 2, kind: input, shape index: {}]   ;;  %s257_s3 = inlined_call_operand.vmem [shape: f32[4,1], index: 3, kind: input, shape index: {}]   ;;  %s258_s4 = inlined_call_operand.vmem [shape: f32[4,1], index: 4, kind: output, shape index: {0}]   ;;  %s259_s5 = inlined_call_operand.vmem [shape: f32[4,1], index: 5, kind: output, shape index: {1}]  }
   0x1   :  { %s19_s20 = sshll.u32 %s254_s0, 4  ;;  %s20_s20 = int_to_ptr.vmem [resolvable:$true] %s19_s20 }
   0x2   :  { %12 = vsyncpa [#allocation5], 0  ;;  %s147_s21 = scalar_lea.vmem %s20_s20, 16  ;;  %p152_p1 = scmp.lt.s32.totalorder %s20_s20, %s20_s20 }
   0x3   :  { %p148_p0 = scmp.ne.s32.totalorder %s20_s20, %s147_s21  ;;  %p153_p2 = scmp.lt.s32.totalorder %s147_s21, %s147_s21 }
   0x5   :  { %p154_p3 = por %p153_p2, %p152_p1 }
   0x7   :  { %p155_p4 = pnand %p154_p3, %p148_p0 }
   0x9   :  { %158 = shalt.err (!%p155_p4)
}
   0xa   :  { %s183_s22 = smov [#allocation4]   ;;  %s184_s23 = smov [#allocation7]  }
   0xb   :  { %22 = dma.vmem_to_smem %s20_s20, 16, %s183_s22, [#allocation6]  }
   0xc   :  { %s28_s24 = sshll.u32 %s184_s23, 4  ;;  %s29_s24 = int_to_ptr.vmem [resolvable:$true] %s28_s24 }
   0xd   :  { %s167_s25 = scalar_lea.vmem %s29_s24, 256  ;;  %p172_p6 = scmp.lt.s32.totalorder %s29_s24, %s29_s24 }
   0xe   :  { %p168_p5 = scmp.ne.s32.totalorder %s29_s24, %s167_s25  ;;  %p173_p7 = scmp.lt.s32.totalorder %s167_s25, %s167_s25 }
  0x10   :  { %p174_p8 = por %p173_p7, %p172_p6 }
  0x12   :  { %p175_p9 = pnand %p174_p8, %p168_p5 }
  0x14   :  { %178 = shalt.err (!%p175_p9)
}
  0x15   :  { %s185_s0 = smov 128   ;;  %s186_s26 = smov 8  }
  0x16   :  { %34 = dma.hbm_to_vmem [thread:$0]  %s255_s1, 256, %s29_s24, [#allocation5], %s185_s0, %s185_s0, %s186_s26  }
  0x17   :  { %179 = dma.done.wait [#allocation6], 16  }
  0x18   :  { %180 = vsyncadd [#allocation6], 4294967280 }
  0x19   :  { %181 = dma.done.wait [#allocation5], 256  }
  0x1a   :  { %182 = vsyncadd [#allocation5], 4294967040 }
  0x1b   :  { %45 = sfence }
  0x1c   :  { %v55_v0 = vld [vmem:[#allocation7] sm:$0xff]  ;;  %v56_v1 = vld [vmem:[#allocation7 + $0x8] sm:$0xff]  ;;  %vm63_vm0 = vcmask 1043456   ;;  %vm52_vm1 = vcmask 3072   ;;  %v187_v26 = vmov 0.0   ;;  %s137_s1 = sld [smem:[#allocation4 + $0x1]] }
  0x1d   :  { %v59_v2 = vcombine.high %v55_v0, %v55_v0  ;;  %v60_v3 = vcombine.high %v56_v1, %v56_v1  ;;  %v64_v4 = vsel %vm63_vm0, %v55_v0, 0.0  ;;  %v65_v5 = vsel %vm63_vm0, %v56_v1, 0.0  ;;  %53 = vst.msk [vmem:[#allocation2] sm:$0xf] %vm52_vm1, %v187_v26  ;;  %54 = vst.msk [vmem:[#allocation3] sm:$0xf] %vm52_vm1, %v187_v26 }
  0x1e   :  { %v66_v6 = vadd.f32 %v65_v5, %v64_v4  ;;  %v70_v7 = vmul.f32 %v55_v0, %v55_v0  ;;  %v71_v8 = vmul.f32 %v56_v1, %v56_v1  ;;  %s103_s29 = sld [smem:[#allocation4]]  ;;  %v114_v42 = vld [vmem:[%s256_s2] sm:$0xf] }
  0x1f   :  { %v67_v9 = vsel %vm63_vm0, %v59_v2, 0.0  ;;  %v68_v10 = vsel %vm63_vm0, %v60_v3, 0.0  ;;  %v115_v46 = vld [vmem:[%s257_s3] sm:$0xf] }
  0x20   :  { %v69_v11 = vadd.f32 %v68_v10, %v67_v9  ;;  %v85_v12 = vsel %vm63_vm0, %v66_v6, 0.0  ;;  %v74_v13 = vcombine.high %v70_v7, %v70_v7  ;;  %v75_v14 = vcombine.high %v71_v8, %v71_v8 }
  0x21   :  { %v78_v15 = vsel %vm63_vm0, %v70_v7, 0.0  ;;  %v79_v16 = vsel %vm63_vm0, %v71_v8, 0.0 }
  0x22   :  { %v86_v17 = vsel %vm63_vm0, %v69_v11, 0.0  ;;  %v80_v18 = vadd.f32 %v79_v16, %v78_v15  ;;  %v81_v19 = vsel %vm63_vm0, %v74_v13, 0.0  ;;  %v82_v20 = vsel %vm63_vm0, %v75_v14, 0.0 }
  0x23   :  { %v87_v21 = vadd.f32 %v86_v17, %v85_v12  ;;  %v83_v22 = vadd.f32 %v82_v20, %v81_v19  ;;  %v116_v41 = vstv %s137_s1 }
  0x24   :  { %v94_v23 = vsel %vm63_vm0, %v80_v18, 0.0  ;;  %v84_v27 = vld [vmem:[#allocation2] sm:$0xf]  ;;  %v93_v30 = vld [vmem:[#allocation3] sm:$0xf]  ;;  %v117_v43 = vmul.f32 %v116_v41, %v114_v42  ;;  %v119_v47 = vstv %s103_s29 }
  0x25   :  { %88 = vadd.xlane.f32.xlu0 %v87_v21  ;;  %v95_v24 = vsel %vm63_vm0, %v83_v22, 0.0 }
  0x26   :  { %v96_v25 = vadd.f32 %v95_v24, %v94_v23 }
  0x29   :  { %97 = vadd.xlane.f32.xlu0 %v96_v25 }
  0xae   :  { %v89_v28 = vpop.xlane.xlu0 %88 }
  0xaf   :  { %v90_v29 = vadd.f32 %v89_v28, %v84_v27 }
  0xb1   :  { %92 = vst.msk [vmem:[#allocation2] sm:$0xf] %vm52_vm1, %v90_v29 }
  0xb2   :  { %v98_v31 = vpop.xlane.xlu0 %97 }
  0xb3   :  { %v99_v32 = vadd.f32 %v98_v31, %v93_v30 }
  0xb5   :  { %100 = vst.msk [vmem:[#allocation3] sm:$0xf] %vm52_vm1, %v99_v32 }
  0xb8   :  { %v105_v33 = vld [vmem:[#allocation2] sm:$0xf] }
  0xb9   :  { %v106_v34 = vmul.f32 0.001953125, %v105_v33 }
  0xbb   :  { %v109_v36 = vmul.f32 %v106_v34, %v106_v34  ;;  %v122_v44 = vmul.f32 %v114_v42, %v106_v34 }
  0xbc   :  { %v107_v35 = vld [vmem:[#allocation3] sm:$0xf] }
  0xbd   :  { %v108_v37 = vmul.f32 0.001953125, %v107_v35 }
  0xbf   :  { %v110_v38 = vsub.f32 %v108_v37, %v109_v36 }
  0xc1   :  { %v111_v39 = vmax.f32 %v110_v38, 0.0 }
  0xc3   :  { %v112_v40 = vadd.f32 1e-05, %v111_v39 }
  0xc5   :  { %145 = vrsqrt.f32 %v112_v40 }
  0xd2   :  { %v146_v45 = vpop.eup %145 }
  0xd3   :  { %v118_v48 = vmul.f32 %v146_v45, %v117_v43  ;;  %v123_v49 = vmul.f32 %v146_v45, %v122_v44 }
  0xd5   :  { %v120_v50 = vadd.f32 %v119_v47, %v118_v48  ;;  %v124_v51 = vsub.f32 %v115_v46, %v123_v49 }
  0xd7   :  { %121 = vst.msk [vmem:[%s258_s4] sm:$0xf] %vm52_vm1, %v120_v50  ;;  %v125_v52 = vmul.f32 %v124_v51, %v116_v41 }
  0xd9   :  { %126 = vst.msk [vmem:[%s259_s5] sm:$0xf] %vm52_vm1, %v125_v52 }
  0xda   :  { %135 = vsyncpa [#allocation5], 1 }
  0xdb   :  { %136 = vsyncpa [#allocation6], 1 }

</bundles_post_ra>
